<compile_context>
chip_gen: v7x
topology: tpu7x:2x2x1
jax: 0.10.0
libtpu: 0.0.40
codegen_flags: <defaults>
</compile_context>

<pallas_src>
import functools

import jax
import jax.numpy as jnp
from jax.experimental import pallas as pl
from jax.experimental.pallas import tpu as pltpu


def _round_up(x, m):
    return (x + m - 1) // m * m


# --------------------------------------------------------------------------
# Pallas kernel: fused (matmul -> InstanceNorm -> PReLU) for one batch element
# --------------------------------------------------------------------------
def _matmul_in_prelu_kernel(x_ref, w_ref, alpha_ref, o_ref, *, eps):
    """x_ref:     (1, R, Fp)   im2col features (VMEM), R = H*W rows
       w_ref:     (Fp, Cp)     weights, channels zero-padded to Cp=128k (VMEM)
       alpha_ref: (1,)         PReLU slope (SMEM scalar)
       o_ref:     (1, R, Cp)   output tile (VMEM), lane-dense last dim
    """
    # Read the PReLU slope first: stays on the scalar path, no broadcast vreg.
    alpha = alpha_ref[0]

    # Single fused MXU contraction (im2col done wrapper-side); f32 accumulator.
    acc = jnp.dot(x_ref[0], w_ref[...], preferred_element_type=jnp.float32)

    # InstanceNorm2d (affine=False, biased variance) over the spatial rows.
    # Stats in f32; padded channels give mean=var=0 -> output 0 (no NaNs).
    mean = jnp.mean(acc, axis=0, keepdims=True)
    cen = acc - mean
    var = jnp.mean(cen * cen, axis=0, keepdims=True)
    y = cen * jax.lax.rsqrt(var + eps)

    # PReLU with a single shared parameter.
    o_ref[0] = jnp.where(y >= 0, y, alpha * y).astype(o_ref.dtype)


def _matmul_in_prelu(feats, weight_mat, alpha, *, eps=1e-5,
                     compute_dtype=jnp.float32):
    """feats: (N, R, F) f32, weight_mat: (F, Cout) f32 -> (N, R, Cout) f32."""
    N, R, F = feats.shape
    Cout = weight_mat.shape[1]
    Fp = _round_up(F, 128)          # lane-dense input loads
    Cp = _round_up(Cout, 128)       # lane-dense accumulator / stores

    feats_p = jnp.pad(feats, ((0, 0), (0, 0), (0, Fp - F))).astype(compute_dtype)
    w_p = jnp.pad(weight_mat, ((0, Fp - F), (0, Cp - Cout))).astype(compute_dtype)
    alpha_arr = jnp.reshape(jnp.asarray(alpha, jnp.float32), (1,))

    out = pl.pallas_call(
        functools.partial(_matmul_in_prelu_kernel, eps=eps),
        out_shape=jax.ShapeDtypeStruct((N, R, Cp), jnp.float32),
        grid=(N,),
        in_specs=[
            pl.BlockSpec((1, R, Fp), lambda n: (n, 0, 0)),
            pl.BlockSpec((Fp, Cp), lambda n: (0, 0)),
            pl.BlockSpec(memory_space=pltpu.MemorySpace.SMEM),
        ],
        out_specs=pl.BlockSpec((1, R, Cp), lambda n: (n, 0, 0)),
        compiler_params=pltpu.CompilerParams(
            dimension_semantics=("parallel",),      # feeds both v7x TCs
            vmem_limit_bytes=32 * 1024 * 1024),
    )(feats_p, w_p, alpha_arr)

    return out[:, :, :Cout]


# --------------------------------------------------------------------------
# Wrapper-side layout plumbing (plain XLA)
# --------------------------------------------------------------------------
def _weight_to_matrix(weight_oihw):
    """(Cout, Cin, K, K) -> (K*K*Cin, Cout), matching the im2col feature order."""
    Cout, Cin, K, _ = weight_oihw.shape
    return jnp.transpose(weight_oihw, (2, 3, 1, 0)).reshape(K * K * Cin, Cout)


def _atrous_im2col(x_nhwc, K, padding, dilation):
    """Build (N, H_out*W_out, K*K*Cin) patches for a dilated KxK conv."""
    N, H, W, Cin = x_nhwc.shape
    x_pad = jnp.pad(x_nhwc, ((0, 0), (padding, padding),
                             (padding, padding), (0, 0)))
    H_out = H + 2 * padding - dilation * (K - 1)
    W_out = W + 2 * padding - dilation * (K - 1)
    slabs = []
    for kh in range(K):
        for kw in range(K):
            slabs.append(x_pad[:, kh * dilation:kh * dilation + H_out,
                               kw * dilation:kw * dilation + W_out, :])
    patches = slabs[0] if len(slabs) == 1 else jnp.concatenate(slabs, axis=-1)
    return patches.reshape(N, H_out * W_out, K * K * Cin), H_out, W_out


def aspp_module_forward(x_nchw, weight_oihw, prelu_alpha, *, padding, dilation,
                        eps=1e-5, compute_dtype=jnp.float32):
    """One ASPPModule: atrous Conv2d -> InstanceNorm2d -> PReLU (NCHW in/out)."""
    N, Cin, H, W = x_nchw.shape
    Cout, _, K, _ = weight_oihw.shape
    x_nhwc = jnp.transpose(x_nchw, (0, 2, 3, 1))
    patches, H_out, W_out = _atrous_im2col(x_nhwc, K, padding, dilation)
    y = _matmul_in_prelu(patches, _weight_to_matrix(weight_oihw), prelu_alpha,
                         eps=eps, compute_dtype=compute_dtype)
    y = y.reshape(N, H_out, W_out, Cout)
    return jnp.transpose(y, (0, 3, 1, 2))


def aspp_forward(x_nchw, params, *, eps=1e-5, compute_dtype=jnp.float32):
    """Full ASPP forward (dropout is never applied in ASPP.forward)."""
    N, Cin, H, W = x_nchw.shape
    x_nhwc = jnp.transpose(x_nchw, (0, 2, 3, 1))

    dilations = (1, 6, 12, 18)
    paddings = (0, 6, 12, 18)
    branch_feats = []
    for w, a, p, d in zip((params["w1"], params["w2"], params["w3"], params["w4"]),
                          (params["a1"], params["a2"], params["a3"], params["a4"]),
                          paddings, dilations):
        K = w.shape[2]
        patches, H_out, W_out = _atrous_im2col(x_nhwc, K, p, d)
        assert (H_out, W_out) == (H, W), "ASPP branches must keep spatial size"
        branch_feats.append(
            _matmul_in_prelu(patches, _weight_to_matrix(w), a,
                             eps=eps, compute_dtype=compute_dtype))  # (N, HW, 16)

    # Global-average-pool branch: AdaptiveAvgPool2d(1) -> 1x1 conv -> IN -> PReLU.
    pooled = jnp.mean(x_nhwc, axis=(1, 2))[:, None, :]               # (N, 1, Cin)
    x5 = _matmul_in_prelu(pooled, _weight_to_matrix(params["w_pool"]),
                          params["a_pool"], eps=eps,
                          compute_dtype=compute_dtype)               # (N, 1, 16)
    # Bilinear upsample of a 1x1 map with align_corners=True == broadcast.
    x5 = jnp.broadcast_to(x5, (N, H * W, x5.shape[-1]))

    out1 = jnp.concatenate(branch_feats + [x5], axis=-1)             # (N, HW, 80)

    # Final 1x1 conv -> InstanceNorm -> PReLU.
    y = _matmul_in_prelu(out1, _weight_to_matrix(params["w_out"]),
                         params["a_out"], eps=eps,
                         compute_dtype=compute_dtype)                # (N, HW, Cout)
    y = y.reshape(N, H, W, -1)
    return jnp.transpose(y, (0, 3, 1, 2))                            # NCHW


# --------------------------------------------------------------------------
# Plain-JAX reference (correctness check only)
# --------------------------------------------------------------------------
def _reference_aspp(x, params, eps=1e-5):
    def conv(inp, w, padding=0, dilation=1):
        return jax.lax.conv_general_dilated(
            inp, w, window_strides=(1, 1),
            padding=((padding, padding), (padding, padding)),
            rhs_dilation=(dilation, dilation),
            dimension_numbers=("NCHW", "OIHW", "NCHW"))

    def in_prelu(y, alpha):
        mean = jnp.mean(y, axis=(2, 3), keepdims=True)
        var = jnp.mean((y - mean) ** 2, axis=(2, 3), keepdims=True)
        y = (y - mean) * jax.lax.rsqrt(var + eps)
        return jnp.where(y >= 0, y, alpha * y)

    x1 = in_prelu(conv(x, params["w1"], 0, 1), params["a1"])
    x2 = in_prelu(conv(x, params["w2"], 6, 6), params["a2"])
    x3 = in_prelu(conv(x, params["w3"], 12, 12), params["a3"])
    x4 = in_prelu(conv(x, params["w4"], 18, 18), params["a4"])
    pooled = jnp.mean(x, axis=(2, 3), keepdims=True)
    x5 = in_prelu(conv(pooled, params["w_pool"]), params["a_pool"])
    x5 = jnp.broadcast_to(x5, (x.shape[0], x5.shape[1]) + x4.shape[2:])
    out1 = jnp.concatenate([x1, x2, x3, x4, x5], axis=1)
    return in_prelu(conv(out1, params["w_out"]), params["a_out"])


if __name__ == "__main__":
    # ASPP(in_planes=4, out_planes=8) on a (2, 4, 16, 16) input.
    N, Cin, H, W = 2, 4, 16, 16
    out_planes = 8

    key = jax.random.PRNGKey(0)
    ks = jax.random.split(key, 7)

    def kaiming(k, shape):  # kaiming_normal_ (fan_in, a=0)
        fan_in = shape[1] * shape[2] * shape[3]
        return jax.random.normal(k, shape, jnp.float32) * jnp.sqrt(2.0 / fan_in)

    params = dict(
        w1=kaiming(ks[0], (16, Cin, 1, 1)), a1=jnp.float32(0.25),
        w2=kaiming(ks[1], (16, Cin, 3, 3)), a2=jnp.float32(0.25),
        w3=kaiming(ks[2], (16, Cin, 3, 3)), a3=jnp.float32(0.25),
        w4=kaiming(ks[3], (16, Cin, 3, 3)), a4=jnp.float32(0.25),
        w_pool=kaiming(ks[4], (16, Cin, 1, 1)), a_pool=jnp.float32(0.25),
        w_out=kaiming(ks[5], (out_planes, 16 * 5, 1, 1)), a_out=jnp.float32(0.25),
    )
    x = jax.random.normal(ks[6], (N, Cin, H, W), jnp.float32)

    ref = _reference_aspp(x, params)

    # f32 MXU-input path (exact fidelity to the PyTorch module).
    out = jax.block_until_ready(aspp_forward(x, params))
    assert out.shape == ref.shape == (N, out_planes, H, W)
    assert jnp.allclose(out, ref, atol=1e-3, rtol=1e-3), "f32 path mismatch"

    # bf16 MXU-input path (v6e/v7x throughput option); stats stay f32,
    # so only the expected bf16-level deviation remains.
    out_bf16 = jax.block_until_ready(
        aspp_forward(x, params, compute_dtype=jnp.bfloat16))
    assert float(jnp.max(jnp.abs(out_bf16 - ref))) < 0.1, "bf16 path mismatch"

    print("KERNEL_OK")
</pallas_src>

<mosaic_0001>
module attributes {stable_mosaic.version = 11 : i64} {
  func.func @_matmul_in_prelu_kernel(%arg0: i32, %arg1: memref<1x256x128xf32, #tpu.memory_space<vmem>>, %arg2: memref<128x128xf32, #tpu.memory_space<vmem>>, %arg3: memref<1xf32, #tpu.memory_space<smem>>, %arg4: memref<1x256x128xf32, #tpu.memory_space<vmem>>) attributes {dimension_semantics = [#tpu.dimension_semantics<parallel>], iteration_bounds = array<i64: 2>, scalar_prefetch = 0 : i64, scratch_operands = 0 : i64, tpu.core_type = #tpu.core_type<tc>, window_params = [{transform_indices = @transform_0, window_bounds = array<i64: 1, 256, 128>}, {pipeline_mode = #tpu.pipeline_mode<synchronous>, transform_indices = @transform_1, window_bounds = array<i64: 128, 128>}, {transform_indices = @transform_2, window_bounds = array<i64: 1>}, {transform_indices = @transform_3, window_bounds = array<i64: 1, 256, 128>}]} {
    %c0 = arith.constant 0 : index
    %0 = memref.load %arg3[%c0] : memref<1xf32, #tpu.memory_space<smem>>
    %c0_0 = arith.constant 0 : index
    %c0_1 = arith.constant 0 : index
    %c0_2 = arith.constant 0 : index
    %1 = vector.load %arg1[%c0_0, %c0_1, %c0_2] : memref<1x256x128xf32, #tpu.memory_space<vmem>>, vector<1x256x128xf32>
    %2 = vector.shape_cast %1 : vector<1x256x128xf32> to vector<256x128xf32>
    %c0_3 = arith.constant 0 : index
    %c0_4 = arith.constant 0 : index
    %3 = vector.load %arg2[%c0_3, %c0_4] : memref<128x128xf32, #tpu.memory_space<vmem>>, vector<128x128xf32>
    %cst = arith.constant dense<0.000000e+00> : vector<256x128xf32>
    %4 = tpu.matmul %2, %3, %cst {dimension_numbers = #tpu.dot_dimension_numbers<[1], [0], [0], [1], [0, 0, 1, 1], [], []>} : vector<256x128xf32>, vector<128x128xf32>, vector<256x128xf32> -> vector<256x128xf32>
    %cst_5 = arith.constant dense<0.000000e+00> : vector<128xf32>
    %5 = vector.multi_reduction <add>, %4, %cst_5 [0] : vector<256x128xf32> to vector<128xf32>
    %6 = vector.shape_cast %5 : vector<128xf32> to vector<1x128xf32>
    %cst_6 = arith.constant 2.560000e+02 : f32
    %7 = vector.broadcast %cst_6 : f32 to vector<1x128xf32>
    %8 = arith.divf %6, %7 : vector<1x128xf32>
    %9 = vector.broadcast %8 : vector<1x128xf32> to vector<256x128xf32>
    %10 = arith.subf %4, %9 : vector<256x128xf32>
    %11 = arith.mulf %10, %10 : vector<256x128xf32>
    %cst_7 = arith.constant dense<0.000000e+00> : vector<128xf32>
    %12 = vector.multi_reduction <add>, %11, %cst_7 [0] : vector<256x128xf32> to vector<128xf32>
    %13 = vector.shape_cast %12 : vector<128xf32> to vector<1x128xf32>
    %cst_8 = arith.constant 2.560000e+02 : f32
    %14 = vector.broadcast %cst_8 : f32 to vector<1x128xf32>
    %15 = arith.divf %13, %14 : vector<1x128xf32>
    %cst_9 = arith.constant 9.99999974E-6 : f32
    %16 = vector.broadcast %cst_9 : f32 to vector<1x128xf32>
    %17 = arith.addf %15, %16 : vector<1x128xf32>
    %18 = math.rsqrt %17 : vector<1x128xf32>
    %19 = vector.broadcast %18 : vector<1x128xf32> to vector<256x128xf32>
    %20 = arith.mulf %10, %19 : vector<256x128xf32>
    %cst_10 = arith.constant 0.000000e+00 : f32
    %21 = vector.broadcast %cst_10 : f32 to vector<256x128xf32>
    %22 = arith.cmpf oge, %20, %21 : vector<256x128xf32>
    %23 = vector.broadcast %0 : f32 to vector<256x128xf32>
    %24 = arith.mulf %23, %20 : vector<256x128xf32>
    %25 = arith.select %22, %20, %24 : vector<256x128xi1>, vector<256x128xf32>
    %c0_11 = arith.constant 0 : index
    %c0_12 = arith.constant 0 : index
    %c0_13 = arith.constant 0 : index
    %26 = vector.load %arg4[%c0_11, %c0_12, %c0_13] : memref<1x256x128xf32, #tpu.memory_space<vmem>>, vector<1x256x128xf32>
    %27 = vector.shape_cast %26 : vector<1x256x128xf32> to vector<256x128xf32>
    %28 = vector.shape_cast %25 : vector<256x128xf32> to vector<1x256x128xf32>
    tpu.vector_store %arg4[%c0_11, %c0_12, %c0_13], %28 {strides = array<i32>} : memref<1x256x128xf32, #tpu.memory_space<vmem>>, vector<1x256x128xf32>,
    return
  }
  func.func @transform_0(%arg0: i32) -> (i32, i32, i32) {
    %c0_i32 = arith.constant 0 : i32
    %c0_i32_0 = arith.constant 0 : i32
    %c0_i32_1 = arith.constant 0 : i32
    return %arg0, %c0_i32, %c0_i32_0 : i32, i32, i32
  }
  func.func @transform_1(%arg0: i32) -> (i32, i32) {
    %c0_i32 = arith.constant 0 : i32
    %c0_i32_0 = arith.constant 0 : i32
    %c0_i32_1 = arith.constant 0 : i32
    return %c0_i32, %c0_i32_0 : i32, i32
  }
  func.func @transform_2(%arg0: i32) -> i32 {
    %c0_i32 = arith.constant 0 : i32
    %c0_i32_0 = arith.constant 0 : i32
    return %c0_i32 : i32
  }
  func.func @transform_3(%arg0: i32) -> (i32, i32, i32) {
    %c0_i32 = arith.constant 0 : i32
    %c0_i32_0 = arith.constant 0 : i32
    %c0_i32_1 = arith.constant 0 : i32
    return %arg0, %c0_i32, %c0_i32_0 : i32, i32, i32
  }
}

</mosaic_0001>

<bundles_post_ra>
// kernel: tpu_custom_call.1
= control target key start
LH: loop header
LB: loop body
LE: loop exit
PB: predicated region body
PF: predicated region fallthrough
CT: control target
= control target key end

     0   :  { %s2060_s0 = inlined_call_operand.hbm [shape: f32[2,256,128], index: 0, kind: input, shape index: {}]   ;;  %s2061_s1 = inlined_call_operand.hbm [shape: f32[128,128], index: 1, kind: input, shape index: {}]   ;;  %s2062_s2 = inlined_call_operand.<no memory space> [shape: f32[1], index: 2, kind: input, shape index: {}]   ;;  %s2063_s3 = inlined_call_operand.hbm [shape: f32[2,256,128], index: 3, kind: output, shape index: {}]  }
   0x1   :  { %8 = sst [smem:[#allocation2]] %s2062_s2 }
   0x2   :  { %9 = vsyncpa [#allocation4], 0 }
   0x3   :  { %11 = vsyncpa [#allocation4 + $0x1], 0 }
   0x4   :  { %12 = vsyncpa [#allocation7], 0 }
   0x5   :  { %13 = vsyncpa [#allocation5], 0 }
   0x6   :  { %15 = vsyncpa [#allocation5 + $0x1], 0  ;;  %s1297_s14 = smov 0   ;;  %s1299_s15 = smov 0  }
   0x7   :  { %s1301_s16 = smov 0   ;;  %s1303_s17 = smov 0  }
   0x8 LB: > { %s1318_s2 = sadd.s32 4294967295, %s1265_s17   ;;  %s880_s18 = sadd.s32 4294967294, %s1265_s17   ;;  %s1265_s17 = sphi %s1303_s17, %s2106_s17   ;;  %s1261_s16 = sphi %s1301_s16, %s2105_s16   ;;  %s1257_s15 = sphi %s1299_s15, %s2104_s15   ;;  %s1253_s14 = sphi %s1297_s14, %s2103_s14  }
   0x9   : > { %p41_p0 = scmp.ne.s32.totalorder %s1257_s15, %s1253_s14  ;;  %p2064_p1 = scmp.eq.s32.totalorder %s1318_s2, 0 }
   0xa   : > { %p113_p3 = scmp.eq.s32.totalorder %s880_s18, 1  ;;  %p881_p5 = scmp.ge.s32.totalorder %s1265_s17, 1 }
   0xb   : > { %p1327_p4 = por %p2064_p1, %p41_p0  ;;  %p120_p7 = scmp.lt.s32.totalorder %s1265_s17, 3 }
   0xc   : > { %p1332_p6 = por %p113_p3, %p41_p0  ;;  %s1267_s22 = smov [#allocation6]  }
   0xd   : > { %s2071_s19 = scalar_select %p1327_p4, 1, 0 }
   0xe   : > { %s2072_s20 = scalar_select %p1332_p6, 1, 0 }
   0xf   : > { %p1337_p8 = pnand %p881_p5, %p120_p7  ;;  %s132_s23 = sshll.u32 %s1267_s22, 4  ;;  %s1341_s23 = int_to_ptr.vmem [resolvable:$true] %s132_s23 }
  0x10   : > { %s1353_s25 = sadd.s32 1, %s1265_s17   ;;  %s28_s26 = sadd.s32 1, %s1261_s16 }
  0x11   : > { %s2073_s21 = scalar_select %p1337_p8, 1, 0 }
  0x12   : > { %p1082_p9 = pneg %p1337_p8  ;;  %s25_s27 = ssub.s32 %s1265_s17, %s1353_s25 }
  0x13   : > { %s1137_s30 = scalar_lea.hbm %s2061_s1, 2048 }
  0x14   : > { %p1348_p11 = pnand %p1082_p9, %p2064_p1  ;;  %p1138_p12 = scmp.ne.s32.totalorder %s2061_s1, %s1137_s30 }
  0x15   : > { %p1144_p5 = scmp.lt.u32.totalorder %s1137_s30, %s2061_s1 }
  0x16   : > { %p1139_p13 = pneg %p1348_p11 }
  0x18   : > { %p1140_p0 = pnand %p1139_p13, %p1138_p12 }
  0x1a   : > { %p1141_p3 = pneg %p1140_p0 }
  0x1c   : > { %p1146_p7 = pnand %p1144_p5, %p1141_p3 }
  0x1e   : > { %1149 = shalt.err (!%p1146_p7)
}
  0x1f   : > { %s1150_s8 = scalar_lea.vmem %s1341_s23, 2048  ;;  %p1158_p2 = scmp.lt.s32.totalorder %s1341_s23, %s1341_s23 }
  0x20   : > { %p1151_p9 = scmp.ne.s32.totalorder %s1341_s23, %s1150_s8  ;;  %p1159_p6 = scmp.lt.s32.totalorder %s1150_s8, %s1150_s8 }
  0x22   : > { %p1153_p10 = pnand %p1151_p9, %p1139_p13  ;;  %p1160_p4 = por %p1159_p6, %p1158_p2 }
  0x24   : > { %p1154_p1 = pneg %p1153_p10 }
  0x26   : > { %p1161_p8 = pnand %p1160_p4, %p1154_p1 }
  0x28   : > { %1164 = shalt.err (!%p1161_p8)
}
  0x29   : > { %s1268_s9 = smov 128   ;;  %s1269_s10 = smov 8  }
  0x2a   : > { %1085 = dma.hbm_to_vmem [thread:$0]  (!%p1348_p11), %s2061_s1, 2048, %s1341_s23, [#allocation7], %s1268_s9, %s1268_s9, %s1269_s10  }
  0x2b   : > { %p26_p1 = scmp.eq.s32.totalorder %s25_s27, 0  ;;  %p35_p2 = scmp.ne.s32.totalorder %s1261_s16, %s1257_s15 }
  0x2c   : > { %p36_p4 = scmp.eq.s32.totalorder %s1265_s17, 0  ;;  %p1095_p6 = scmp.lt.s32.totalorder %s1265_s17, 2 }
  0x2d   : > { %s1387_s13 = scalar_select %p26_p1, %s1261_s16, %s28_s26  }
  0x2e   : > { %p37_p8 = por %p36_p4, %p35_p2  ;;  %p2075_p10 = scmp.eq.s32.totalorder %s1318_s2, 1 }
  0x2f   : > { %s149_s22 = sand.u32 1, %s1261_s16   ;;  %s896_s24 = sshll.u32 %s1265_s17, 12 }
  0x30   : > { %p1391_p12 = por %p2075_p10, %p35_p2  ;;  %s884_s28 = sshll.u32 %s149_s22, 8 }
  0x31   : > { %s1400_s4 = scalar_lea.hbm %s2060_s0, %s896_s24  ;;  %s153_s23 = scalar_lea.vmem [#allocation3], %s884_s28 }
  0x32   : > { %s160_s26 = sshll.u32 %s153_s23, 4  ;;  %p1402_p11 = pnand %p1095_p6, %p37_p8  ;;  %s1406_s26 = int_to_ptr.vmem [resolvable:$true] %s160_s26 }
  0x33   : > { %s1408_s5 = scalar_lea.sflag [#allocation4], %s149_s22  ;;  %s1165_s6 = scalar_lea.hbm %s1400_s4, 4096 }
  0x34   : > { %p1166_p13 = scmp.ne.s32.totalorder %s1400_s4, %s1165_s6  ;;  %p1167_p0 = pneg %p1402_p11 }
  0x35   : > { %s1170_s11 = scalar_lea.hbm %s2060_s0, 8192  ;;  %p1171_p7 = scmp.lt.u32.totalorder %s1400_s4, %s2060_s0 }
  0x36   : > { %p1168_p3 = pnand %p1167_p0, %p1166_p13  ;;  %p1172_p9 = scmp.lt.u32.totalorder %s1170_s11, %s1165_s6 }
  0x37   : > { %p1174_p2 = scmp.lt.u32.totalorder %s1165_s6, %s1400_s4 }
  0x38   : > { %p1169_p5 = pneg %p1168_p3  ;;  %p1173_p1 = por %p1172_p9, %p1171_p7 }
  0x3a   : > { %p1175_p4 = por %p1174_p2, %p1173_p1 }
  0x3c   : > { %p1176_p6 = pnand %p1175_p4, %p1169_p5 }
  0x3e   : > { %1179 = shalt.err (!%p1176_p6)
}
  0x3f   : > { %s1180_s22 = scalar_lea.vmem %s1406_s26, 4096  ;;  %s1270_s28 = smov [#allocation3]  }
  0x40   : > { %p1181_p8 = scmp.ne.s32.totalorder %s1406_s26, %s1180_s22  ;;  %s1185_s29 = sshll.u32 %s1270_s28, 4  ;;  %s1186_s29 = int_to_ptr.vmem [resolvable:$false] %s1185_s29 }
  0x41   : > { %s1187_s30 = scalar_lea.vmem %s1186_s29, 8192  ;;  %p1188_p3 = scmp.lt.s32.totalorder %s1406_s26, %s1186_s29 }
  0x42   : > { %p1183_p10 = pnand %p1181_p8, %p1167_p0  ;;  %p1189_p7 = scmp.lt.s32.totalorder %s1187_s30, %s1180_s22 }
  0x44   : > { %p1184_p13 = pneg %p1183_p10  ;;  %p1190_p9 = por %p1189_p7, %p1188_p3 }
  0x46   : > { %p1191_p1 = pnand %p1190_p9, %p1184_p13 }
  0x48   : > { %1194 = shalt.err (!%p1191_p1)
}
  0x49   : > { %1089 = dma.hbm_to_vmem [thread:$0]  (!%p1402_p11), %s1400_s4, 4096, %s1406_s26, %s1408_s5, %s1268_s9, %s1268_s9, %s1269_s10  }
  0x4a   : > { %p2078_p0 = scmp.ne.s32.totalorder %s2073_s21, 0 }
  0x4c   : > { %172 = sbr.rel (%p2078_p0) target bundleno = 566 (0x236), region = 32 }
  0x53   : > { %s1442_s23 = sand.u32 1, %s1257_s15   ;;  %p2079_p5 = scmp.ne.s32.totalorder %s2071_s19, 0 }
  0x54   : > { %s888_s6 = sshll.u32 %s1442_s23, 8  ;;  %s175_s7 = scalar_lea.sflag [#allocation4], %s1442_s23 }
  0x55   : > { %s1448_s27 = scalar_lea.vmem [#allocation3], %s888_s6 }
  0x56   : > { %1240 = dma.done.wait (%p2079_p5), %s175_s7, 4096  }
  0x57   : > { %1242 = vsyncadd (%p2079_p5), %s175_s7, 4294963200  ;;  %p2080_p11 = scmp.eq.s32.totalorder %s1318_s2, 0 }
  0x59   : > { %1244 = dma.done.wait (%p2080_p11), [#allocation7], 2048   ;;  %p2081_p2 = pmov %p2080_p11 }
  0x5a   : > { %v238_v0 = vld [vmem:[#allocation6] sm:$0xff]  ;;  %v239_v1 = vld [vmem:[#allocation6 + $0x8] sm:$0xff]  ;;  %v240_v2 = vld [vmem:[#allocation6 + $0x10] sm:$0xff]  ;;  %s205_s19 = sld [smem:[#allocation2]]  ;;  %s1696_s21 = scalar_lea.vmem [#allocation8], %s888_s6 }
  0x5b   : > { %1246 = vsyncadd (%p2081_p2), [#allocation7], 4294965248  ;;  %v1026_v3 = vpack.c.bf16 %v239_v1, %v238_v0  ;;  %v241_v4 = vld [vmem:[#allocation6 + $0x18] sm:$0xff]  ;;  %v242_v6 = vld [vmem:[#allocation6 + $0x20] sm:$0xff]  ;;  %s897_s9 = sshll.u32 %s1318_s2, 12  ;;  %s797_s10 = sshll.u32 %s1696_s21, 4  ;;  %s1980_s10 = int_to_ptr.vmem [resolvable:$true] %s797_s10 }
  0x5c   : > { %v1030_v5 = vpack.c.bf16 %v241_v4, %v240_v2  ;;  %v243_v7 = vld [vmem:[#allocation6 + $0x28] sm:$0xff]  ;;  %v206_v9 = vld [vmem:[%s1448_s27] sm:$0xff]  ;;  %v244_v10 = vld [vmem:[#allocation6 + $0x30] sm:$0xff]  ;;  %s1978_s26 = scalar_lea.hbm %s2063_s3, %s897_s9  ;;  %s784_s5 = scalar_lea.sflag [#allocation5], %s1442_s23 }
  0x5d   : > { %1027 = vmatprep.subr.bf16.mxu0 %v1026_v3  ;;  %1058 = vmatprep.subr.bf16.mxu1 %v1026_v3  ;;  %v1034_v8 = vpack.c.bf16 %v243_v7, %v242_v6  ;;  %v245_v11 = vld [vmem:[#allocation6 + $0x38] sm:$0xff]  ;;  %v246_v13 = vld [vmem:[#allocation6 + $0x40] sm:$0xff]  ;;  %v247_v14 = vld [vmem:[#allocation6 + $0x48] sm:$0xff]  ;;  %s1195_s8 = scalar_lea.vmem %s1980_s10, 4096  ;;  %s1271_s11 = smov [#allocation8]  }
  0x5e   : > { %1029 = vmatpush3.bf16.msra.mxu0 %v1026_v3  ;;  %1066 = vmatpush3.bf16.msra.mxu1 %v1026_v3  ;;  %v1038_v12 = vpack.c.bf16 %v245_v11, %v244_v10  ;;  %v222_v15 = vld [vmem:[%s1448_s27 + $0x80] sm:$0xff]  ;;  %v1042_v16 = vpack.c.bf16 %v247_v14, %v246_v13  ;;  %v248_v17 = vld [vmem:[#allocation6 + $0x50] sm:$0xff]  ;;  %v249_v18 = vld [vmem:[#allocation6 + $0x58] sm:$0xff]  ;;  %p1196_p4 = scmp.ne.s32.totalorder %s1980_s10, %s1195_s8  ;;  %s1199_s12 = sshll.u32 %s1271_s11, 4  ;;  %s1200_s12 = int_to_ptr.vmem [resolvable:$false] %s1199_s12 }
  0x5f   : > { %1031 = vmatprep.subr.bf16.mxu0 %v1030_v5  ;;  %1059 = vmatprep.subr.bf16.mxu1 %v1030_v5  ;;  %v1046_v19 = vpack.c.bf16 %v249_v18, %v248_v17  ;;  %v250_v20 = vld [vmem:[#allocation6 + $0x60] sm:$0xff]  ;;  %v251_v21 = vld [vmem:[#allocation6 + $0x68] sm:$0xff]  ;;  %v252_v23 = vld [vmem:[#allocation6 + $0x70] sm:$0xff]  ;;  %s1201_s24 = scalar_lea.vmem %s1200_s12, 8192  ;;  %p1202_p10 = scmp.lt.s32.totalorder %s1980_s10, %s1200_s12 }
  0x60   : > { %978 = vmatprep.mubr.f32.mxu0 %v206_v9  ;;  %1002 = vmatprep.mubr.f32.mxu1 %v222_v15  ;;  %v1050_v22 = vpack.c.bf16 %v251_v21, %v250_v20  ;;  %v253_v24 = vld [vmem:[#allocation6 + $0x78] sm:$0xff]  ;;  %v207_v26 = vld [vmem:[%s1448_s27 + $0x8] sm:$0xff]  ;;  %v208_v28 = vld [vmem:[%s1448_s27 + $0x10] sm:$0xff]  ;;  %p1197_p6 = pnand %p1196_p4, %p1391_p12  ;;  %p1203_p13 = scmp.lt.s32.totalorder %s1201_s24, %s1195_s8 }
  0x61   : > { %v1054_v25 = vpack.c.bf16 %v253_v24, %v252_v23  ;;  %v223_v27 = vld [vmem:[%s1448_s27 + $0x88] sm:$0xff]  ;;  %v224_v29 = vld [vmem:[%s1448_s27 + $0x90] sm:$0xff]  ;;  %v209_v30 = vld [vmem:[%s1448_s27 + $0x18] sm:$0xff] }
  0x62   : > { %1033 = vmatpush3.bf16.msra.mxu0 %v1030_v5  ;;  %1067 = vmatpush3.bf16.msra.mxu1 %v1030_v5  ;;  %v225_v31 = vld [vmem:[%s1448_s27 + $0x98] sm:$0xff]  ;;  %v210_v32 = vld [vmem:[%s1448_s27 + $0x20] sm:$0xff]  ;;  %v211_v34 = vld [vmem:[%s1448_s27 + $0x28] sm:$0xff]  ;;  %p1198_p8 = pneg %p1197_p6  ;;  %p1204_p3 = por %p1203_p13, %p1202_p10 }
  0x63   : > { %1035 = vmatprep.subr.bf16.mxu0 %v1034_v8  ;;  %1060 = vmatprep.subr.bf16.mxu1 %v1034_v8  ;;  %v226_v33 = vld [vmem:[%s1448_s27 + $0xa0] sm:$0xff]  ;;  %v227_v35 = vld [vmem:[%s1448_s27 + $0xa8] sm:$0xff]  ;;  %v212_v36 = vld [vmem:[%s1448_s27 + $0x30] sm:$0xff] }
  0x64   : > { %v228_v37 = vld [vmem:[%s1448_s27 + $0xb0] sm:$0xff]  ;;  %v213_v38 = vld [vmem:[%s1448_s27 + $0x38] sm:$0xff]  ;;  %v214_v40 = vld [vmem:[%s1448_s27 + $0x40] sm:$0xff]  ;;  %p1205_p7 = pnand %p1204_p3, %p1198_p8 }
  0x65   : > { %v229_v39 = vld [vmem:[%s1448_s27 + $0xb8] sm:$0xff]  ;;  %v230_v41 = vld [vmem:[%s1448_s27 + $0xc0] sm:$0xff]  ;;  %v215_v42 = vld [vmem:[%s1448_s27 + $0x48] sm:$0xff] }
  0x66   : > { %1037 = vmatpush3.bf16.msra.mxu0 %v1034_v8  ;;  %1068 = vmatpush3.bf16.msra.mxu1 %v1034_v8  ;;  %v231_v43 = vld [vmem:[%s1448_s27 + $0xc8] sm:$0xff]  ;;  %v216_v44 = vld [vmem:[%s1448_s27 + $0x50] sm:$0xff]  ;;  %v217_v46 = vld [vmem:[%s1448_s27 + $0x58] sm:$0xff] }
  0x67   : > { %1039 = vmatprep.subr.bf16.mxu0 %v1038_v12  ;;  %1061 = vmatprep.subr.bf16.mxu1 %v1038_v12  ;;  %v232_v45 = vld [vmem:[%s1448_s27 + $0xd0] sm:$0xff]  ;;  %v233_v47 = vld [vmem:[%s1448_s27 + $0xd8] sm:$0xff]  ;;  %v218_v48 = vld [vmem:[%s1448_s27 + $0x60] sm:$0xff] }
  0x68   : > { %v234_v49 = vld [vmem:[%s1448_s27 + $0xe0] sm:$0xff]  ;;  %v219_v50 = vld [vmem:[%s1448_s27 + $0x68] sm:$0xff]  ;;  %v220_v52 = vld [vmem:[%s1448_s27 + $0x70] sm:$0xff] }
  0x69   : > { %v235_v51 = vld [vmem:[%s1448_s27 + $0xe8] sm:$0xff]  ;;  %v236_v53 = vld [vmem:[%s1448_s27 + $0xf0] sm:$0xff]  ;;  %v221_v54 = vld [vmem:[%s1448_s27 + $0x78] sm:$0xff] }
  0x6a   : > { %1041 = vmatpush3.bf16.msra.mxu0 %v1038_v12  ;;  %1069 = vmatpush3.bf16.msra.mxu1 %v1038_v12  ;;  %v237_v55 = vld [vmem:[%s1448_s27 + $0xf8] sm:$0xff] }
  0x6b   : > { %1043 = vmatprep.subr.bf16.mxu0 %v1042_v16  ;;  %1062 = vmatprep.subr.bf16.mxu1 %v1042_v16 }
  0x6e   : > { %1045 = vmatpush3.bf16.msra.mxu0 %v1042_v16  ;;  %1070 = vmatpush3.bf16.msra.mxu1 %v1042_v16 }
  0x6f   : > { %1047 = vmatprep.subr.bf16.mxu0 %v1046_v19  ;;  %1063 = vmatprep.subr.bf16.mxu1 %v1046_v19 }
  0x72   : > { %1049 = vmatpush3.bf16.msra.mxu0 %v1046_v19  ;;  %1071 = vmatpush3.bf16.msra.mxu1 %v1046_v19 }
  0x73   : > { %1051 = vmatprep.subr.bf16.mxu0 %v1050_v22  ;;  %1064 = vmatprep.subr.bf16.mxu1 %v1050_v22 }
  0x76   : > { %1053 = vmatpush3.bf16.msra.mxu0 %v1050_v22  ;;  %1072 = vmatpush3.bf16.msra.mxu1 %v1050_v22 }
  0x77   : > { %1055 = vmatprep.subr.bf16.mxu0 %v1054_v25  ;;  %1065 = vmatprep.subr.bf16.mxu1 %v1054_v25 }
  0x7a   : > { %1057 = vmatpush3.bf16.msra.mxu0 %v1054_v25  ;;  %1073 = vmatpush3.bf16.msra.mxu1 %v1054_v25 }
  0x7d   : > { %979 = vmatmul.mubr.f32.vlgmr.msra.gmra.mrb[0].mxu0 %v207_v26  ;;  %1003 = vmatmul.mubr.f32.vlgmr.msra.gmra.mrb[0].mxu1 %v223_v27 }
  0x7e   : > { %981 = vmatprep.mubr.f32.mxu0 %v208_v28  ;;  %1005 = vmatprep.mubr.f32.mxu1 %v224_v29 }
  0x81   : > { %982 = vmatmul.mubr.f32.gmra.mrb[2].mxu0 %v209_v30  ;;  %1006 = vmatmul.mubr.f32.gmra.mrb[2].mxu1 %v225_v31 }
  0x82   : > { %984 = vmatprep.mubr.f32.mxu0 %v210_v32  ;;  %1008 = vmatprep.mubr.f32.mxu1 %v226_v33 }
  0x85   : > { %985 = vmatmul.mubr.f32.gmra.mrb[4].mxu0 %v211_v34  ;;  %1009 = vmatmul.mubr.f32.gmra.mrb[4].mxu1 %v227_v35 }
  0x86   : > { %987 = vmatprep.mubr.f32.mxu0 %v212_v36  ;;  %1011 = vmatprep.mubr.f32.mxu1 %v228_v37 }
  0x89   : > { %988 = vmatmul.mubr.f32.gmra.mrb[6].mxu0 %v213_v38  ;;  %1012 = vmatmul.mubr.f32.gmra.mrb[6].mxu1 %v229_v39 }
  0x8a   : > { %990 = vmatprep.mubr.f32.mxu0 %v214_v40  ;;  %1014 = vmatprep.mubr.f32.mxu1 %v230_v41 }
  0x8d   : > { %991 = vmatmul.mubr.f32.gmra.mrb[8].mxu0 %v215_v42  ;;  %1015 = vmatmul.mubr.f32.gmra.mrb[8].mxu1 %v231_v43 }
  0x8e   : > { %993 = vmatprep.mubr.f32.mxu0 %v216_v44  ;;  %1017 = vmatprep.mubr.f32.mxu1 %v232_v45 }
  0x91   : > { %994 = vmatmul.mubr.f32.gmra.mrb[10].mxu0 %v217_v46  ;;  %1018 = vmatmul.mubr.f32.gmra.mrb[10].mxu1 %v233_v47 }
  0x92   : > { %996 = vmatprep.mubr.f32.mxu0 %v218_v48  ;;  %1020 = vmatprep.mubr.f32.mxu1 %v234_v49 }
  0x95   : > { %997 = vmatmul.mubr.f32.gmra.mrb[12].mxu0 %v219_v50  ;;  %1021 = vmatmul.mubr.f32.gmra.mrb[12].mxu1 %v235_v51 }
  0x96   : > { %999 = vmatprep.mubr.f32.mxu0 %v220_v52  ;;  %1023 = vmatprep.mubr.f32.mxu1 %v236_v53 }
  0x99   : > { %1000 = vmatmul.mubr.f32.gmra.mrb[14].mxu0 %v221_v54  ;;  %1024 = vmatmul.mubr.f32.gmra.mrb[14].mxu1 %v237_v55 }
 0x150   : > { %v1490_v56 = vpop.f32.mrb[0].mxu0  ;;  %v1492_v57 = vpop.f32.mrb[0].mxu1 }
 0x151   : > { %v1494_v58 = vpop.f32.mrb[1].mxu0  ;;  %v1496_v59 = vpop.f32.mrb[1].mxu1 }
 0x152   : > { %v479_v60 = vadd.f32 %v1490_v56, %v1494_v58 }
 0x154   : > { %v1500_v61 = vpop.f32.mrb[2].mxu0  ;;  %v1502_v62 = vpop.f32.mrb[2].mxu1 }
 0x155   : > { %v1504_v63 = vpop.f32.mrb[3].mxu0  ;;  %v1506_v0 = vpop.f32.mrb[3].mxu1 }
 0x156   : > { %v480_v1 = vadd.f32 %v479_v60, %v1504_v63 }
 0x158   : > { %v1509_v2 = vpop.f32.mrb[4].mxu0  ;;  %v481_v3 = vadd.f32 %v1500_v61, %v480_v1  ;;  %v1512_v4 = vpop.f32.mrb[4].mxu1 }
 0x159   : > { %v340_v5 = vpop.f32.mrb[5].mxu0  ;;  %v1514_v6 = vpop.f32.mrb[5].mxu1 }
 0x15a   : > { %v482_v7 = vadd.f32 %v481_v3, %v340_v5 }
 0x15c   : > { %v989_v8 = vpop.f32.mrb[6].mxu0  ;;  %v483_v9 = vadd.f32 %v1509_v2, %v482_v7  ;;  %v1517_v10 = vpop.f32.mrb[6].mxu1 }
 0x15d   : > { %v350_v11 = vpop.f32.mrb[7].mxu0  ;;  %v1519_v12 = vpop.f32.mrb[7].mxu1 }
 0x15e   : > { %v484_v13 = vadd.f32 %v483_v9, %v350_v11 }
 0x160   : > { %v992_v14 = vpop.f32.mrb[8].mxu0  ;;  %v485_v15 = vadd.f32 %v989_v8, %v484_v13  ;;  %v1521_v16 = vpop.f32.mrb[8].mxu1 }
 0x161   : > { %v360_v17 = vpop.f32.mrb[9].mxu0  ;;  %v1523_v18 = vpop.f32.mrb[9].mxu1 }
 0x162   : > { %v486_v19 = vadd.f32 %v485_v15, %v360_v17 }
 0x164   : > { %v995_v20 = vpop.f32.mrb[10].mxu0  ;;  %v487_v21 = vadd.f32 %v992_v14, %v486_v19  ;;  %v1525_v22 = vpop.f32.mrb[10].mxu1 }
 0x165   : > { %v370_v23 = vpop.f32.mrb[11].mxu0  ;;  %v1527_v24 = vpop.f32.mrb[11].mxu1 }
 0x166   : > { %v488_v25 = vadd.f32 %v487_v21, %v370_v23 }
 0x168   : > { %v998_v26 = vpop.f32.mrb[12].mxu0  ;;  %v489_v27 = vadd.f32 %v995_v20, %v488_v25  ;;  %v1529_v28 = vpop.f32.mrb[12].mxu1 }
 0x169   : > { %v380_v29 = vpop.f32.mrb[13].mxu0  ;;  %v460_v30 = vpop.f32.mrb[13].mxu1 }
 0x16a   : > { %v490_v31 = vadd.f32 %v489_v27, %v380_v29 }
 0x16c   : > { %v1001_v32 = vpop.f32.mrb[14].mxu0  ;;  %v491_v33 = vadd.f32 %v998_v26, %v490_v31  ;;  %v1025_v34 = vpop.f32.mrb[14].mxu1 }
 0x16d   : > { %v390_v35 = vpop.f32.mrb[15].mxu0  ;;  %v470_v36 = vpop.f32.mrb[15].mxu1 }
 0x16e   : > { %v492_v37 = vadd.f32 %v491_v33, %v390_v35 }
 0x170   : > { %v493_v38 = vadd.f32 %v1001_v32, %v492_v37 }
 0x172   : > { %v494_v39 = vadd.f32 %v493_v38, %v1496_v59 }
 0x174   : > { %v495_v40 = vadd.f32 %v1492_v57, %v494_v39 }
 0x176   : > { %v496_v41 = vadd.f32 %v495_v40, %v1506_v0 }
 0x178   : > { %v497_v42 = vadd.f32 %v1502_v62, %v496_v41 }
 0x17a   : > { %v498_v43 = vadd.f32 %v497_v42, %v1514_v6 }
 0x17c   : > { %v499_v44 = vadd.f32 %v1512_v4, %v498_v43 }
 0x17e   : > { %v500_v45 = vadd.f32 %v499_v44, %v1519_v12 }
 0x180   : > { %v501_v46 = vadd.f32 %v1517_v10, %v500_v45 }
 0x182   : > { %v502_v47 = vadd.f32 %v501_v46, %v1523_v18 }
 0x184   : > { %v503_v48 = vadd.f32 %v1521_v16, %v502_v47 }
 0x186   : > { %v504_v49 = vadd.f32 %v503_v48, %v1527_v24 }
 0x188   : > { %v505_v50 = vadd.f32 %v1525_v22, %v504_v49 }
 0x18a   : > { %v506_v51 = vadd.f32 %v505_v50, %v460_v30 }
 0x18c   : > { %v507_v52 = vadd.f32 %v1529_v28, %v506_v51 }
 0x18e   : > { %v508_v53 = vadd.f32 %v507_v52, %v470_v36 }
 0x190   : > { %v509_v54 = vadd.f32 %v1025_v34, %v508_v53 }
 0x192   : > { %v510_v55 = vrot.slane %v509_v54, 4 }
 0x194   : > { %v511_v60 = vadd.f32 %v510_v55, %v509_v54 }
 0x196   : > { %v512_v1 = vrot.slane %v511_v60, 2 }
 0x198   : > { %v513_v3 = vadd.f32 %v512_v1, %v511_v60 }
 0x19a   : > { %v514_v7 = vrot.slane %v513_v3, 1 }
 0x19c   : > { %v515_v9 = vadd.f32 %v514_v7, %v513_v3 }
 0x19e   : > { %v517_v13 = vmul.f32 0.00390625, %v515_v9 }
 0x1a0   : > { %v1545_v15 = vsub.f32 %v1494_v58, %v517_v13  ;;  %v1548_v19 = vsub.f32 %v1490_v56, %v517_v13  ;;  %v1551_v21 = vsub.f32 %v1504_v63, %v517_v13  ;;  %v1554_v25 = vsub.f32 %v1500_v61, %v517_v13 }
 0x1a1   : > { %v1556_v27 = vsub.f32 %v340_v5, %v517_v13  ;;  %v1559_v31 = vsub.f32 %v1509_v2, %v517_v13  ;;  %v1561_v33 = vsub.f32 %v350_v11, %v517_v13  ;;  %v1563_v37 = vsub.f32 %v989_v8, %v517_v13 }
 0x1a2   : > { %v1565_v58 = vsub.f32 %v360_v17, %v517_v13  ;;  %v1567_v38 = vsub.f32 %v992_v14, %v517_v13  ;;  %v1569_v56 = vsub.f32 %v370_v23, %v517_v13  ;;  %v1571_v63 = vsub.f32 %v995_v20, %v517_v13 }
 0x1a3   : > { %v1573_v39 = vsub.f32 %v380_v29, %v517_v13  ;;  %v1575_v61 = vsub.f32 %v998_v26, %v517_v13  ;;  %v1577_v5 = vsub.f32 %v390_v35, %v517_v13  ;;  %v1579_v2 = vsub.f32 %v1001_v32, %v517_v13 }
 0x1a4   : > { %v1582_v11 = vsub.f32 %v1496_v59, %v517_v13  ;;  %v1585_v8 = vsub.f32 %v1492_v57, %v517_v13  ;;  %v1588_v14 = vsub.f32 %v1506_v0, %v517_v13  ;;  %v1591_v17 = vsub.f32 %v1502_v62, %v517_v13 }
 0x1a5   : > { %v1594_v20 = vsub.f32 %v1514_v6, %v517_v13  ;;  %v1597_v23 = vsub.f32 %v1512_v4, %v517_v13  ;;  %v1600_v26 = vsub.f32 %v1519_v12, %v517_v13  ;;  %v1603_v59 = vsub.f32 %v1517_v10, %v517_v13 }
 0x1a6   : > { %v1606_v57 = vsub.f32 %v1523_v18, %v517_v13  ;;  %v1609_v0 = vsub.f32 %v1521_v16, %v517_v13  ;;  %v1612_v62 = vsub.f32 %v1527_v24, %v517_v13  ;;  %v1615_v6 = vsub.f32 %v1525_v22, %v517_v13 }
 0x1a7   : > { %v1617_v4 = vsub.f32 %v460_v30, %v517_v13  ;;  %v1620_v12 = vsub.f32 %v1529_v28, %v517_v13  ;;  %v1622_v29 = vsub.f32 %v470_v36, %v517_v13  ;;  %v1624_v10 = vsub.f32 %v1025_v34, %v517_v13 }
 0x1a8   : > { %v550_v18 = vmul.f32 %v1545_v15, %v1545_v15  ;;  %v551_v16 = vmul.f32 %v1548_v19, %v1548_v19  ;;  %v552_v24 = vmul.f32 %v1551_v21, %v1551_v21  ;;  %v553_v30 = vmul.f32 %v1554_v25, %v1554_v25 }
 0x1a9   : > { %v554_v28 = vmul.f32 %v1556_v27, %v1556_v27  ;;  %v555_v34 = vmul.f32 %v1559_v31, %v1559_v31  ;;  %v556_v40 = vmul.f32 %v1561_v33, %v1561_v33  ;;  %v557_v42 = vmul.f32 %v1563_v37, %v1563_v37 }
 0x1aa   : > { %v582_v22 = vadd.f32 %v551_v16, %v550_v18  ;;  %v558_v44 = vmul.f32 %v1565_v58, %v1565_v58  ;;  %v559_v46 = vmul.f32 %v1567_v38, %v1567_v38  ;;  %v560_v48 = vmul.f32 %v1569_v56, %v1569_v56 }
 0x1ab   : > { %v561_v50 = vmul.f32 %v1571_v63, %v1571_v63  ;;  %v562_v52 = vmul.f32 %v1573_v39, %v1573_v39  ;;  %v563_v54 = vmul.f32 %v1575_v61, %v1575_v61  ;;  %v564_v60 = vmul.f32 %v1577_v5, %v1577_v5 }
 0x1ac   : > { %v583_v32 = vadd.f32 %v582_v22, %v552_v24  ;;  %v565_v3 = vmul.f32 %v1579_v2, %v1579_v2  ;;  %v566_v9 = vmul.f32 %v1582_v11, %v1582_v11  ;;  %v567_v18 = vmul.f32 %v1585_v8, %v1585_v8 }
 0x1ad   : > { %v568_v24 = vmul.f32 %v1588_v14, %v1588_v14 }
 0x1ae   : > { %v584_v35 = vadd.f32 %v583_v32, %v553_v30  ;;  %v569_v30 = vmul.f32 %v1591_v17, %v1591_v17 }
 0x1b0   : > { %v585_v36 = vadd.f32 %v584_v35, %v554_v28  ;;  %v570_v28 = vmul.f32 %v1594_v20, %v1594_v20 }
 0x1b2   : > { %v586_v41 = vadd.f32 %v585_v36, %v555_v34  ;;  %v571_v34 = vmul.f32 %v1597_v23, %v1597_v23 }
 0x1b4   : > { %v587_v43 = vadd.f32 %v586_v41, %v556_v40  ;;  %v572_v40 = vmul.f32 %v1600_v26, %v1600_v26 }
 0x1b6   : > { %v588_v45 = vadd.f32 %v587_v43, %v557_v42  ;;  %v573_v42 = vmul.f32 %v1603_v59, %v1603_v59 }
 0x1b8   : > { %v589_v47 = vadd.f32 %v588_v45, %v558_v44  ;;  %v574_v44 = vmul.f32 %v1606_v57, %v1606_v57 }
 0x1ba   : > { %v590_v49 = vadd.f32 %v589_v47, %v559_v46  ;;  %v575_v46 = vmul.f32 %v1609_v0, %v1609_v0 }
 0x1bc   : > { %v591_v51 = vadd.f32 %v590_v49, %v560_v48  ;;  %v576_v48 = vmul.f32 %v1612_v62, %v1612_v62 }
 0x1be   : > { %v592_v53 = vadd.f32 %v591_v51, %v561_v50  ;;  %v577_v50 = vmul.f32 %v1615_v6, %v1615_v6 }
 0x1c0   : > { %v593_v55 = vadd.f32 %v592_v53, %v562_v52  ;;  %v578_v52 = vmul.f32 %v1617_v4, %v1617_v4 }
 0x1c2   : > { %v594_v1 = vadd.f32 %v593_v55, %v563_v54  ;;  %v579_v54 = vmul.f32 %v1620_v12, %v1620_v12 }
 0x1c4   : > { %v595_v7 = vadd.f32 %v594_v1, %v564_v60  ;;  %v580_v60 = vmul.f32 %v1622_v29, %v1622_v29 }
 0x1c6   : > { %v596_v13 = vadd.f32 %v595_v7, %v565_v3  ;;  %v581_v3 = vmul.f32 %v1624_v10, %v1624_v10 }
 0x1c8   : > { %v597_v16 = vadd.f32 %v596_v13, %v566_v9 }
 0x1ca   : > { %v598_v22 = vadd.f32 %v597_v16, %v567_v18 }
 0x1cc   : > { %v599_v32 = vadd.f32 %v598_v22, %v568_v24 }
 0x1ce   : > { %v600_v35 = vadd.f32 %v599_v32, %v569_v30 }
 0x1d0   : > { %v601_v36 = vadd.f32 %v600_v35, %v570_v28 }
 0x1d2   : > { %v602_v41 = vadd.f32 %v601_v36, %v571_v34  ;;  %v1690_v34 = vstv %s205_s19 }
 0x1d4   : > { %v603_v43 = vadd.f32 %v602_v41, %v572_v40 }
 0x1d6   : > { %v604_v45 = vadd.f32 %v603_v43, %v573_v42 }
 0x1d8   : > { %v605_v47 = vadd.f32 %v604_v45, %v574_v44 }
 0x1da   : > { %v606_v49 = vadd.f32 %v605_v47, %v575_v46 }
 0x1dc   : > { %v607_v51 = vadd.f32 %v606_v49, %v576_v48 }
 0x1de   : > { %v608_v53 = vadd.f32 %v607_v51, %v577_v50 }
 0x1e0   : > { %v609_v55 = vadd.f32 %v608_v53, %v578_v52 }
 0x1e2   : > { %v610_v1 = vadd.f32 %v609_v55, %v579_v54 }
 0x1e4   : > { %v611_v7 = vadd.f32 %v610_v1, %v580_v60 }
 0x1e6   : > { %v612_v9 = vadd.f32 %v611_v7, %v581_v3 }
 0x1e8   : > { %v613_v13 = vrot.slane %v612_v9, 4 }
 0x1ea   : > { %v614_v18 = vadd.f32 %v613_v13, %v612_v9 }
 0x1ec   : > { %v615_v16 = vrot.slane %v614_v18, 2 }
 0x1ee   : > { %v616_v24 = vadd.f32 %v615_v16, %v614_v18 }
 0x1f0   : > { %v617_v22 = vrot.slane %v616_v24, 1 }
 0x1f2   : > { %v618_v30 = vadd.f32 %v617_v22, %v616_v24 }
 0x1f4   : > { %v619_v32 = vmul.f32 0.00390625, %v618_v30 }
 0x1f6   : > { %v620_v28 = vadd.f32 1e-05, %v619_v32 }
 0x1f8   : > { %1135 = vrsqrt.f32 %v620_v28 }
 0x202   : > { %v1136_v35 = vpop.eup %1135 }
 0x203   : > { %v652_v36 = vmul.f32 %v1136_v35, %v1622_v29  ;;  %v1700_v42 = vmul.f32 %v1136_v35, %v1545_v15  ;;  %v1703_v43 = vmul.f32 %v1136_v35, %v1548_v19  ;;  %v1706_v44 = vmul.f32 %v1136_v35, %v1551_v21 }
 0x204   : > { %v1709_v29 = vmul.f32 %v1136_v35, %v1554_v25  ;;  %v1712_v45 = vmul.f32 %v1136_v35, %v1556_v27  ;;  %v1715_v46 = vmul.f32 %v1136_v35, %v1559_v31  ;;  %v1718_v47 = vmul.f32 %v1136_v35, %v1561_v33 }
 0x205   : > { %vm684_vm0 = vcmp.ge.f32.partialorder %v652_v36, 0.0  ;;  %v717_v40 = vmul.f32 %v1690_v34, %v652_v36  ;;  %v1721_v15 = vmul.f32 %v1136_v35, %v1563_v37  ;;  %v1724_v19 = vmul.f32 %v1136_v35, %v1565_v58 }
 0x206   : > { %v1727_v21 = vmul.f32 %v1136_v35, %v1567_v38  ;;  %v1730_v25 = vmul.f32 %v1136_v35, %v1569_v56  ;;  %v1733_v27 = vmul.f32 %v1136_v35, %v1617_v4  ;;  %v1736_v31 = vmul.f32 %v1136_v35, %v1620_v12 }
 0x207   : > { %v749_v41 = vsel %vm684_vm0, %v652_v36, %v717_v40  ;;  %v1739_v33 = vmul.f32 %v1136_v35, %v1624_v10  ;;  %v1742_v37 = vmul.f32 %v1136_v35, %v1571_v63  ;;  %v1745_v58 = vmul.f32 %v1136_v35, %v1573_v39 }
 0x208   : > { %781 = vst [vmem:[%s1696_s21 + $0xf0] sm:$0xff] %v749_v41  ;;  %2082 = vst [vmem:[#allocation12_spill] sm:$0xff] %v1733_v27  ;;  %v1748_v38 = vmul.f32 %v1136_v35, %v1575_v61  ;;  %v1751_v56 = vmul.f32 %v1136_v35, %v1577_v5  ;;  %v1754_v4 = vmul.f32 %v1136_v35, %v1579_v2  ;;  %vm654_vm1 = vcmp.ge.f32.partialorder %v1700_v42, 0.0 }
 0x209   : > { %v1757_v12 = vmul.f32 %v1136_v35, %v1582_v11  ;;  %v1760_v10 = vmul.f32 %v1136_v35, %v1585_v8  ;;  %v1763_v63 = vmul.f32 %v1136_v35, %v1588_v14  ;;  %v1766_v39 = vmul.f32 %v1136_v35, %v1591_v17 }
 0x20a   : > { %v1769_v61 = vmul.f32 %v1136_v35, %v1594_v20  ;;  %v1772_v5 = vmul.f32 %v1136_v35, %v1597_v23  ;;  %v1775_v2 = vmul.f32 %v1136_v35, %v1600_v26  ;;  %v1778_v11 = vmul.f32 %v1136_v35, %v1603_v59 }
 0x20b   : > { %v1781_v8 = vmul.f32 %v1136_v35, %v1606_v57  ;;  %v1784_v14 = vmul.f32 %v1136_v35, %v1609_v0  ;;  %v1787_v17 = vmul.f32 %v1136_v35, %v1612_v62  ;;  %v1790_v20 = vmul.f32 %v1136_v35, %v1615_v6 }
 0x20c   : > { %vm655_vm2 = vcmp.ge.f32.partialorder %v1703_v43, 0.0  ;;  %vm656_vm3 = vcmp.ge.f32.partialorder %v1706_v44, 0.0  ;;  %vm657_vm4 = vcmp.ge.f32.partialorder %v1709_v29, 0.0  ;;  %vm658_vm5 = vcmp.ge.f32.partialorder %v1712_v45, 0.0 }
 0x20d   : > { %2083 = vst [vmem:[#allocation13_spill] sm:$0xff] %v1790_v20  ;;  %vm659_vm6 = vcmp.ge.f32.partialorder %v1715_v46, 0.0  ;;  %vm660_vm7 = vcmp.ge.f32.partialorder %v1718_v47, 0.0  ;;  %vm661_vm8 = vcmp.ge.f32.partialorder %v1721_v15, 0.0  ;;  %vm662_vm9 = vcmp.ge.f32.partialorder %v1724_v19, 0.0 }
 0x20e   : > { %vm666_vm13 = vcmp.ge.f32.partialorder %v1745_v58, 0.0  ;;  %vm667_vm14 = vcmp.ge.f32.partialorder %v1748_v38, 0.0  ;;  %vm668_vm15 = vcmp.ge.f32.partialorder %v1751_v56, 0.0  ;;  %v687_v23 = vmul.f32 %v1690_v34, %v1700_v42 }
 0x20f   : > { %v688_v26 = vmul.f32 %v1690_v34, %v1703_v43  ;;  %v689_v59 = vmul.f32 %v1690_v34, %v1706_v44  ;;  %v690_v57 = vmul.f32 %v1690_v34, %v1709_v29  ;;  %v691_v0 = vmul.f32 %v1690_v34, %v1712_v45 }
 0x210   : > { %v692_v62 = vmul.f32 %v1690_v34, %v1715_v46  ;;  %v693_v6 = vmul.f32 %v1690_v34, %v1718_v47  ;;  %v694_v48 = vmul.f32 %v1690_v34, %v1721_v15  ;;  %v695_v49 = vmul.f32 %v1690_v34, %v1724_v19 }
 0x211   : > { %v696_v50 = vmul.f32 %v1690_v34, %v1727_v21  ;;  %v697_v51 = vmul.f32 %v1690_v34, %v1730_v25  ;;  %v698_v52 = vmul.f32 %v1690_v34, %v1742_v37  ;;  %v699_v53 = vmul.f32 %v1690_v34, %v1745_v58 }
 0x212   : > { %v700_v54 = vmul.f32 %v1690_v34, %v1748_v38  ;;  %vm681_vm0 = vcmp.ge.f32.partialorder %v1790_v20, 0.0  ;;  %vm682_vm10 = vcmp.ge.f32.partialorder %v1733_v27, 0.0  ;;  %vm683_vm11 = vcmp.ge.f32.partialorder %v1736_v31, 0.0 }
 0x213   : > { %vm685_vm12 = vcmp.ge.f32.partialorder %v1739_v33, 0.0  ;;  %v701_v55 = vmul.f32 %v1690_v34, %v1751_v56  ;;  %v702_v60 = vmul.f32 %v1690_v34, %v1754_v4  ;;  %v703_v1 = vmul.f32 %v1690_v34, %v1757_v12 }
 0x214   : > { %v704_v3 = vmul.f32 %v1690_v34, %v1760_v10  ;;  %v705_v7 = vmul.f32 %v1690_v34, %v1763_v63  ;;  %v706_v9 = vmul.f32 %v1690_v34, %v1766_v39  ;;  %v707_v13 = vmul.f32 %v1690_v34, %v1769_v61 }
 0x215   : > { %v708_v18 = vmul.f32 %v1690_v34, %v1772_v5  ;;  %v709_v16 = vmul.f32 %v1690_v34, %v1775_v2  ;;  %v710_v24 = vmul.f32 %v1690_v34, %v1778_v11  ;;  %v711_v22 = vmul.f32 %v1690_v34, %v1781_v8 }
 0x216   : > { %v712_v30 = vmul.f32 %v1690_v34, %v1784_v14  ;;  %v713_v32 = vmul.f32 %v1690_v34, %v1787_v17  ;;  %v714_v28 = vmul.f32 %v1690_v34, %v1790_v20  ;;  %v715_v35 = vmul.f32 %v1690_v34, %v1733_v27 }
 0x217   : > { %v716_v36 = vmul.f32 %v1690_v34, %v1736_v31  ;;  %v718_v40 = vmul.f32 %v1690_v34, %v1739_v33  ;;  %v719_v41 = vsel %vm654_vm1, %v1700_v42, %v687_v23  ;;  %v720_v20 = vsel %vm655_vm2, %v1703_v43, %v688_v26 }
 0x218   : > { %v721_v27 = vsel %vm656_vm3, %v1706_v44, %v689_v59  ;;  %v722_v34 = vsel %vm657_vm4, %v1709_v29, %v690_v57  ;;  %v723_v42 = vsel %vm658_vm5, %v1712_v45, %v691_v0  ;;  %v724_v23 = vsel %vm659_vm6, %v1715_v46, %v692_v62  ;;  %751 = vst [vmem:[%s1696_s21] sm:$0xff] %v719_v41 }
 0x219   : > { %v725_v43 = vsel %vm660_vm7, %v1718_v47, %v693_v6  ;;  %752 = vst [vmem:[%s1696_s21 + $0x8] sm:$0xff] %v720_v20  ;;  %753 = vst [vmem:[%s1696_s21 + $0x10] sm:$0xff] %v721_v27  ;;  %v726_v44 = vsel %vm661_vm8, %v1721_v15, %v694_v48  ;;  %v727_v29 = vsel %vm662_vm9, %v1724_v19, %v695_v49  ;;  %vm2084_vm1 = vcmp.ge.f32.partialorder %v1727_v21, 0.0 }
 0x21a   : > { %v728_v45 = vsel %vm2084_vm1, %v1727_v21, %v696_v50  ;;  %vm2085_vm2 = vcmp.ge.f32.partialorder %v1730_v25, 0.0  ;;  %754 = vst [vmem:[%s1696_s21 + $0x18] sm:$0xff] %v722_v34  ;;  %755 = vst [vmem:[%s1696_s21 + $0x20] sm:$0xff] %v723_v42  ;;  %vm2086_vm3 = vcmp.ge.f32.partialorder %v1742_v37, 0.0  ;;  %v731_v15 = vsel %vm666_vm13, %v1745_v58, %v699_v53 }
 0x21b   : > { %v729_v46 = vsel %vm2085_vm2, %v1730_v25, %v697_v51  ;;  %756 = vst [vmem:[%s1696_s21 + $0x28] sm:$0xff] %v724_v23  ;;  %757 = vst [vmem:[%s1696_s21 + $0x30] sm:$0xff] %v725_v43  ;;  %v730_v47 = vsel %vm2086_vm3, %v1742_v37, %v698_v52  ;;  %v732_v19 = vsel %vm667_vm14, %v1748_v38, %v700_v54  ;;  %vm2087_vm4 = vcmp.ge.f32.partialorder %v1754_v4, 0.0 }
 0x21c   : > { %v733_v21 = vsel %vm668_vm15, %v1751_v56, %v701_v55  ;;  %758 = vst [vmem:[%s1696_s21 + $0x38] sm:$0xff] %v726_v44  ;;  %759 = vst [vmem:[%s1696_s21 + $0x40] sm:$0xff] %v727_v29  ;;  %v734_v25 = vsel %vm2087_vm4, %v1754_v4, %v702_v60  ;;  %vm2088_vm5 = vcmp.ge.f32.partialorder %v1757_v12, 0.0  ;;  %vm2089_vm6 = vcmp.ge.f32.partialorder %v1760_v10, 0.0 }
 0x21d   : > { %760 = vst [vmem:[%s1696_s21 + $0x48] sm:$0xff] %v728_v45  ;;  %761 = vst [vmem:[%s1696_s21 + $0x50] sm:$0xff] %v729_v46  ;;  %v735_v27 = vsel %vm2088_vm5, %v1757_v12, %v703_v1  ;;  %v736_v37 = vsel %vm2089_vm6, %v1760_v10, %v704_v3  ;;  %vm2090_vm7 = vcmp.ge.f32.partialorder %v1763_v63, 0.0  ;;  %vm2091_vm8 = vcmp.ge.f32.partialorder %v1766_v39, 0.0 }
 0x21e   : > { %v737_v58 = vsel %vm2090_vm7, %v1763_v63, %v705_v7  ;;  %762 = vst [vmem:[%s1696_s21 + $0x58] sm:$0xff] %v730_v47  ;;  %763 = vst [vmem:[%s1696_s21 + $0x60] sm:$0xff] %v731_v15  ;;  %v738_v38 = vsel %vm2091_vm8, %v1766_v39, %v706_v9  ;;  %vm2092_vm9 = vcmp.ge.f32.partialorder %v1769_v61, 0.0  ;;  %vm2093_vm13 = vcmp.ge.f32.partialorder %v1772_v5, 0.0 }
 0x21f   : > { %764 = vst [vmem:[%s1696_s21 + $0x68] sm:$0xff] %v732_v19  ;;  %765 = vst [vmem:[%s1696_s21 + $0x70] sm:$0xff] %v733_v21  ;;  %v739_v56 = vsel %vm2092_vm9, %v1769_v61, %v707_v13  ;;  %v740_v4 = vsel %vm2093_vm13, %v1772_v5, %v708_v18  ;;  %vm2094_vm14 = vcmp.ge.f32.partialorder %v1775_v2, 0.0  ;;  %vm2095_vm15 = vcmp.ge.f32.partialorder %v1778_v11, 0.0  ;;  %v2099_v5 = vld [vmem:[#allocation13_spill] sm:$0xff] }
 0x220   : > { %v741_v12 = vsel %vm2094_vm14, %v1775_v2, %v709_v16  ;;  %766 = vst [vmem:[%s1696_s21 + $0x78] sm:$0xff] %v734_v25  ;;  %767 = vst [vmem:[%s1696_s21 + $0x80] sm:$0xff] %v735_v27  ;;  %v742_v10 = vsel %vm2095_vm15, %v1778_v11, %v710_v24  ;;  %vm2096_vm1 = vcmp.ge.f32.partialorder %v1781_v8, 0.0  ;;  %vm2097_vm2 = vcmp.ge.f32.partialorder %v1784_v14, 0.0  ;;  %v2100_v11 = vld [vmem:[#allocation12_spill] sm:$0xff] }
 0x221   : > { %768 = vst [vmem:[%s1696_s21 + $0x88] sm:$0xff] %v736_v37  ;;  %769 = vst [vmem:[%s1696_s21 + $0x90] sm:$0xff] %v737_v58  ;;  %v743_v63 = vsel %vm2096_vm1, %v1781_v8, %v711_v22  ;;  %v744_v39 = vsel %vm2097_vm2, %v1784_v14, %v712_v30  ;;  %vm2098_vm3 = vcmp.ge.f32.partialorder %v1787_v17, 0.0  ;;  %v746_v2 = vsel %vm681_vm0, %v2099_v5, %v714_v28 }
 0x222   : > { %v745_v61 = vsel %vm2098_vm3, %v1787_v17, %v713_v32  ;;  %770 = vst [vmem:[%s1696_s21 + $0x98] sm:$0xff] %v738_v38  ;;  %771 = vst [vmem:[%s1696_s21 + $0xa0] sm:$0xff] %v739_v56  ;;  %v747_v8 = vsel %vm682_vm10, %v2100_v11, %v715_v35  ;;  %v748_v14 = vsel %vm683_vm11, %v1736_v31, %v716_v36 }
 0x223   : > { %772 = vst [vmem:[%s1696_s21 + $0xa8] sm:$0xff] %v740_v4  ;;  %773 = vst [vmem:[%s1696_s21 + $0xb0] sm:$0xff] %v741_v12  ;;  %v750_v17 = vsel %vm685_vm12, %v1739_v33, %v718_v40 }
 0x224   : > { %774 = vst [vmem:[%s1696_s21 + $0xb8] sm:$0xff] %v742_v10  ;;  %775 = vst [vmem:[%s1696_s21 + $0xc0] sm:$0xff] %v743_v63 }
 0x225   : > { %776 = vst [vmem:[%s1696_s21 + $0xc8] sm:$0xff] %v744_v39  ;;  %777 = vst [vmem:[%s1696_s21 + $0xd0] sm:$0xff] %v745_v61 }
 0x226   : > { %778 = vst [vmem:[%s1696_s21 + $0xd8] sm:$0xff] %v746_v2  ;;  %779 = vst [vmem:[%s1696_s21 + $0xe0] sm:$0xff] %v747_v8 }
 0x227   : > { %780 = vst [vmem:[%s1696_s21 + $0xe8] sm:$0xff] %v748_v14  ;;  %782 = vst [vmem:[%s1696_s21 + $0xf8] sm:$0xff] %v750_v17 }
 0x228   : > { %1208 = shalt.err (!%p1205_p7)
}
 0x229   : > { %s1209_s22 = scalar_lea.hbm %s1978_s26, 4096  ;;  %s1213_s30 = scalar_lea.hbm %s2063_s3, 8192 }
 0x22a   : > { %p1210_p9 = scmp.ne.s32.totalorder %s1978_s26, %s1209_s22  ;;  %p1214_p5 = scmp.lt.u32.totalorder %s1978_s26, %s2063_s3 }
 0x22b   : > { %p1215_p11 = scmp.lt.u32.totalorder %s1213_s30, %s1209_s22  ;;  %p1217_p4 = scmp.lt.u32.totalorder %s1209_s22, %s1978_s26 }
 0x22c   : > { %p1211_p1 = pnand %p1210_p9, %p1391_p12 }
 0x22d   : > { %p1216_p2 = por %p1215_p11, %p1214_p5 }
 0x22e   : > { %p1212_p0 = pneg %p1211_p1 }
 0x22f   : > { %p1218_p6 = por %p1217_p4, %p1216_p2 }
 0x231   : > { %p1219_p8 = pnand %p1218_p6, %p1212_p0 }
 0x233   : > { %1222 = shalt.err (!%p1219_p8)
}
 0x234   : > { %s1272_s27 = smov 128   ;;  %s1273_s19 = smov 8  }
 0x235   : > { %1080 = dma.vmem_to_hbm [thread:$0]  (%p1391_p12), %s1980_s10, 4096, %s1978_s26, %s784_s5, %s1272_s27, %s1272_s27, %s1273_s19  }
 0x236 PF: > { %s812_s21 = sand.u32 1, %s1253_s14   ;;  %p2101_p10 = scmp.ne.s32.totalorder %s2072_s20, 0 }
 0x237   : > { %p2102_p13 = scmp.ge.s32.totalorder %s1265_s17, 2  ;;  %s813_s9 = scalar_lea.sflag [#allocation5], %s812_s21 }
 0x239   : > { %p1091_p3 = pnand %p2102_p13, %p2101_p10 }
 0x23b   : > { %1248 = dma.done.wait (!%p1091_p3), %s813_s9, 4096  }
 0x23c   : > { %1250 = vsyncadd (!%p1091_p3), %s813_s9, 4294963200  ;;  %p18_p7 = scmp.ge.s32.totalorder %s1353_s25, 4   ;;  %s2103_s14 = smov %s1257_s15 }
 0x23d   : > { %s2104_s15 = smov %s1261_s16  ;;  %s2105_s16 = smov %s1387_s13 }
 0x23e   : > { %s2106_s17 = smov %s1353_s25  ;;  %20 = sbr.rel (!%p18_p7) target bundleno = 8 (0x8), region = 81 }
 0x245   :  { %818 = vsyncpa [#allocation4], 1 }
 0x246   :  { %820 = vsyncpa [#allocation4 + $0x1], 1 }
 0x247   :  { %821 = vsyncpa [#allocation7], 1 }
 0x248   :  { %822 = vsyncpa [#allocation5], 1 }
 0x249   :  { %824 = vsyncpa [#allocation5 + $0x1], 1 }

</bundles_post_ra>
